<compile_context>
chip_gen: v7x
topology: tpu7x:2x2x1
jax: 0.10.0
libtpu: 0.0.40
codegen_flags: <defaults>
</compile_context>

<pallas_src>
import functools

import jax
import jax.numpy as jnp
from jax.experimental import pallas as pl
from jax.experimental.pallas import tpu as pltpu

KERNEL_MUL = 2.0
KERNEL_NUM = 5
# fix_sigma = None in the reference module -> bandwidth derived from data.

_DEFAULT_TILE = 256  # multiple of 128; fits comfortably in v5e/v6e/v7x VMEM.


def _round_up(x, m):
    return ((x + m - 1) // m) * m


def _make_mmd_kernel(batch, n_valid, tile):
    """Per-tile kernel: (T, T) piece of the multi-scale Gaussian kernel matrix."""

    def kernel(scales_ref, a_ref, b_ref, out_ref):
        i = pl.program_id(0)
        j = pl.program_id(1)

        a = a_ref[...]                                   # (T, D) f32, resident per i
        b = b_ref[...]                                   # (T, D) f32, streams over j

        # Pairwise squared L2 distances via ||x||^2 + ||y||^2 - 2 x.y.
        a_sq = jnp.sum(a * a, axis=-1, keepdims=True)    # (T, 1)
        b_sq = jnp.sum(b * b, axis=-1, keepdims=True)    # (T, 1)
        gram = jax.lax.dot_general(                      # MXU, no transposed copy
            a, b, (((1,), (1,)), ((), ())),
            preferred_element_type=jnp.float32)          # (T, T)
        l2 = a_sq + jnp.transpose(b_sq) - 2.0 * gram
        l2 = jnp.maximum(l2, 0.0)                        # clamp FP cancellation

        # Multi-scale Gaussian kernel sum; scales_ref[s] = -1 / bw_s (SMEM scalar).
        k_sum = jnp.zeros_like(l2)
        for s in range(KERNEL_NUM):
            k_sum = k_sum + jnp.exp(l2 * scales_ref[s])

        # Rank-1 sign: +1 for source rows/cols, -1 for target, 0 for padding.
        row_g = i * tile + jax.lax.broadcasted_iota(jnp.int32, (tile, 1), 0)
        col_g = j * tile + jax.lax.broadcasted_iota(jnp.int32, (1, tile), 1)

        def sgn(idx):
            s = jnp.where(idx < batch, 1.0, -1.0).astype(jnp.float32)
            return jnp.where(idx < n_valid, s, jnp.float32(0.0))

        s_row = sgn(row_g)                               # (T, 1)
        s_col = sgn(col_g)                               # (1, T)

        # sum_{r,c} k[r,c] * s_row[r] * s_col[c], kept lane-dense as (1, T).
        partial = jnp.sum(k_sum * s_row, axis=0, keepdims=True) * s_col

        @pl.when(j == 0)
        def _():
            out_ref[...] = jnp.zeros_like(out_ref)

        out_ref[...] += partial.reshape(1, 1, tile)

    return kernel


@functools.partial(jax.jit, static_argnames=("kernel_mul", "kernel_num", "tile"))
def mmd_loss(source, target, kernel_mul=KERNEL_MUL, kernel_num=KERNEL_NUM,
             tile=_DEFAULT_TILE):
    """Pallas implementation of MMD_Loss.forward(source, target)."""
    assert source.shape == target.shape and source.ndim == 2
    b = source.shape[0]
    total = jnp.concatenate([source, target], axis=0).astype(jnp.float32)
    n, d = total.shape

    # ---- bandwidth in O(n*D) (closed form), outside the kernel --------------
    # sum_ij ||xi - xj||^2 = 2*n*sum_i ||xi||^2 - 2*||sum_i xi||^2
    sq_norms = jnp.sum(total * total, axis=-1)           # (n,)
    col_sum = jnp.sum(total, axis=0)                     # (d,)
    l2_total = 2.0 * n * jnp.sum(sq_norms) - 2.0 * jnp.sum(col_sum * col_sum)
    bandwidth = l2_total / jnp.float32(n * n - n)
    bandwidth = bandwidth / jnp.float32(kernel_mul ** (kernel_num // 2))
    bw_list = (bandwidth * jnp.float32(kernel_mul)
               ** jnp.arange(kernel_num, dtype=jnp.float32)) + jnp.float32(1e-9)
    neg_inv_bw = (-1.0 / bw_list).astype(jnp.float32)    # (kernel_num,), SMEM prefetch

    # ---- tiling --------------------------------------------------------------
    n_r = _round_up(n, 8)
    t = min(tile, n_r)                                   # multiple of 8 by construction
    n_pad = _round_up(n, t)
    if n_pad != n:
        total_p = jnp.zeros((n_pad, d), jnp.float32).at[:n].set(total)
    else:
        total_p = total
    grid = (n_pad // t, n_pad // t)

    kernel = _make_mmd_kernel(b, n, t)

    partials = pl.pallas_call(
        kernel,
        out_shape=jax.ShapeDtypeStruct((grid[0], 1, t), jnp.float32),
        grid_spec=pltpu.PrefetchScalarGridSpec(
            num_scalar_prefetch=1,
            grid=grid,
            in_specs=[
                # A row block: resident across the inner (j) axis.
                pl.BlockSpec((t, d), lambda i, j, scales: (i, 0)),
                # B row block: streams over j (double-buffered by Pallas).
                pl.BlockSpec((t, d), lambda i, j, scales: (j, 0)),
            ],
            out_specs=pl.BlockSpec((1, 1, t), lambda i, j, scales: (i, 0, 0)),
        ),
        compiler_params=pltpu.CompilerParams(
            dimension_semantics=("parallel", "arbitrary"),
        ),
    )(neg_inv_bw, total_p, total_p)

    return jnp.sum(partials) / jnp.float32(b * b)


def mmd_loss_ref(source, target, kernel_mul=KERNEL_MUL, kernel_num=KERNEL_NUM):
    """Pure-JAX reference mirroring the PyTorch module exactly."""
    b = source.shape[0]
    total = jnp.concatenate([source, target], axis=0)
    n = total.shape[0]
    diff = total[None, :, :] - total[:, None, :]
    l2 = jnp.sum(diff * diff, axis=2)
    bandwidth = jnp.sum(l2) / (n * n - n)
    bandwidth = bandwidth / (kernel_mul ** (kernel_num // 2))
    k = sum(jnp.exp(-l2 / (bandwidth * kernel_mul ** i + 1e-9))
            for i in range(kernel_num))
    xx = k[:b, :b]
    yy = k[b:, b:]
    xy = k[:b, b:]
    yx = k[b:, :b]
    return jnp.mean(xx + yy - xy - yx)


if __name__ == "__main__":
    key = jax.random.PRNGKey(0)
    k1, k2, k3, k4 = jax.random.split(key, 4)

    # Small case (single tile, matches the module's typical small batches).
    B, D = 8, 32
    source = jax.random.normal(k1, (B, D), dtype=jnp.float32)
    target = jax.random.normal(k2, (B, D), dtype=jnp.float32) + 0.5
    loss = jax.block_until_ready(mmd_loss(source, target))
    ref = jax.block_until_ready(mmd_loss_ref(source, target))
    assert jnp.isfinite(loss), "non-finite loss (small case)"
    assert jnp.allclose(loss, ref, rtol=2e-4, atol=2e-5), (loss, ref)

    # Larger case: exercises the 2x2 tile grid, streaming j-accumulation and
    # the row-padding path (n = 384 -> padded to 512 with T = 256).
    B2, D2 = 192, 64
    src2 = jax.random.normal(k3, (B2, D2), dtype=jnp.float32)
    tgt2 = jax.random.normal(k4, (B2, D2), dtype=jnp.float32) + 0.5
    loss2 = jax.block_until_ready(mmd_loss(src2, tgt2))
    ref2 = jax.block_until_ready(mmd_loss_ref(src2, tgt2))
    assert jnp.isfinite(loss2), "non-finite loss (tiled case)"
    assert jnp.allclose(loss2, ref2, rtol=1e-3, atol=1e-4), (loss2, ref2)

    print("KERNEL_OK")
</pallas_src>

<mosaic_0001>
module attributes {stable_mosaic.version = 11 : i64} {
  func.func @kernel(%arg0: i32, %arg1: i32, %arg2: memref<5xf32, #tpu.memory_space<smem>>, %arg3: memref<16x32xf32, #tpu.memory_space<vmem>>, %arg4: memref<16x32xf32, #tpu.memory_space<vmem>>, %arg5: memref<1x1x16xf32, #tpu.memory_space<vmem>>) attributes {dimension_semantics = [#tpu.dimension_semantics<parallel>, #tpu.dimension_semantics<arbitrary>], iteration_bounds = array<i64: 1, 1>, scalar_prefetch = 1 : i64, scratch_operands = 0 : i64, tpu.core_type = #tpu.core_type<tc>, window_params = [{transform_indices = @transform_0, window_bounds = array<i64: 16, 32>}, {transform_indices = @transform_1, window_bounds = array<i64: 16, 32>}, {transform_indices = @transform_2, window_bounds = array<i64: 1, 1, 16>}]} {
    %c0 = arith.constant 0 : index
    %c0_0 = arith.constant 0 : index
    %0 = vector.load %arg3[%c0, %c0_0] : memref<16x32xf32, #tpu.memory_space<vmem>>, vector<16x32xf32>
    %c0_1 = arith.constant 0 : index
    %c0_2 = arith.constant 0 : index
    %1 = vector.load %arg4[%c0_1, %c0_2] : memref<16x32xf32, #tpu.memory_space<vmem>>, vector<16x32xf32>
    %2 = arith.mulf %0, %0 : vector<16x32xf32>
    %cst = arith.constant dense<0.000000e+00> : vector<16xf32>
    %3 = vector.multi_reduction <add>, %2, %cst [1] : vector<16x32xf32> to vector<16xf32>
    %4 = vector.shape_cast %3 : vector<16xf32> to vector<16x1xf32>
    %5 = arith.mulf %1, %1 : vector<16x32xf32>
    %cst_3 = arith.constant dense<0.000000e+00> : vector<16xf32>
    %6 = vector.multi_reduction <add>, %5, %cst_3 [1] : vector<16x32xf32> to vector<16xf32>
    %7 = vector.shape_cast %6 : vector<16xf32> to vector<16x1xf32>
    %cst_4 = arith.constant dense<0.000000e+00> : vector<16x16xf32>
    %8 = tpu.matmul %0, %1, %cst_4 {dimension_numbers = #tpu.dot_dimension_numbers<[1], [1], [0], [0], [0, 0, 1, 0], [], []>} : vector<16x32xf32>, vector<16x32xf32>, vector<16x16xf32> -> vector<16x16xf32>
    %9 = tpu.transpose %7, [1, 0] : vector<16x1xf32> -> vector<1x16xf32>
    %10 = vector.broadcast %4 : vector<16x1xf32> to vector<16x16xf32>
    %11 = vector.broadcast %9 : vector<1x16xf32> to vector<16x16xf32>
    %12 = arith.addf %10, %11 : vector<16x16xf32>
    %cst_5 = arith.constant 2.000000e+00 : f32
    %13 = vector.broadcast %cst_5 : f32 to vector<16x16xf32>
    %14 = arith.mulf %13, %8 : vector<16x16xf32>
    %15 = arith.subf %12, %14 : vector<16x16xf32>
    %cst_6 = arith.constant 0.000000e+00 : f32
    %16 = vector.broadcast %cst_6 : f32 to vector<16x16xf32>
    %17 = arith.maximumf %15, %16 : vector<16x16xf32>
    %cst_7 = arith.constant 0.000000e+00 : f32
    %18 = vector.broadcast %cst_7 : f32 to vector<16x16xf32>
    %c0_8 = arith.constant 0 : index
    %19 = memref.load %arg2[%c0_8] : memref<5xf32, #tpu.memory_space<smem>>
    %20 = vector.broadcast %19 : f32 to vector<16x16xf32>
    %21 = arith.mulf %17, %20 : vector<16x16xf32>
    %22 = math.exp %21 : vector<16x16xf32>
    %23 = arith.addf %18, %22 : vector<16x16xf32>
    %c1 = arith.constant 1 : index
    %24 = memref.load %arg2[%c1] : memref<5xf32, #tpu.memory_space<smem>>
    %25 = vector.broadcast %24 : f32 to vector<16x16xf32>
    %26 = arith.mulf %17, %25 : vector<16x16xf32>
    %27 = math.exp %26 : vector<16x16xf32>
    %28 = arith.addf %23, %27 : vector<16x16xf32>
    %c2 = arith.constant 2 : index
    %29 = memref.load %arg2[%c2] : memref<5xf32, #tpu.memory_space<smem>>
    %30 = vector.broadcast %29 : f32 to vector<16x16xf32>
    %31 = arith.mulf %17, %30 : vector<16x16xf32>
    %32 = math.exp %31 : vector<16x16xf32>
    %33 = arith.addf %28, %32 : vector<16x16xf32>
    %c3 = arith.constant 3 : index
    %34 = memref.load %arg2[%c3] : memref<5xf32, #tpu.memory_space<smem>>
    %35 = vector.broadcast %34 : f32 to vector<16x16xf32>
    %36 = arith.mulf %17, %35 : vector<16x16xf32>
    %37 = math.exp %36 : vector<16x16xf32>
    %38 = arith.addf %33, %37 : vector<16x16xf32>
    %c4 = arith.constant 4 : index
    %39 = memref.load %arg2[%c4] : memref<5xf32, #tpu.memory_space<smem>>
    %40 = vector.broadcast %39 : f32 to vector<16x16xf32>
    %41 = arith.mulf %17, %40 : vector<16x16xf32>
    %42 = math.exp %41 : vector<16x16xf32>
    %43 = arith.addf %38, %42 : vector<16x16xf32>
    %c16_i32 = arith.constant 16 : i32
    %44 = arith.muli %arg0, %c16_i32 : i32
    %45 = tpu.iota {dimensions = array<i32: 0>} : vector<16x1xi32>
    %46 = vector.broadcast %44 : i32 to vector<16x1xi32>
    %47 = arith.addi %46, %45 : vector<16x1xi32>
    %c16_i32_9 = arith.constant 16 : i32
    %48 = arith.muli %arg1, %c16_i32_9 : i32
    %49 = tpu.iota {dimensions = array<i32: 1>} : vector<1x16xi32>
    %50 = vector.broadcast %48 : i32 to vector<1x16xi32>
    %51 = arith.addi %50, %49 : vector<1x16xi32>
    %c8_i32 = arith.constant 8 : i32
    %52 = vector.broadcast %c8_i32 : i32 to vector<16x1xi32>
    %53 = arith.cmpi slt, %47, %52 : vector<16x1xi32>
    %cst_10 = arith.constant 1.000000e+00 : f32
    %cst_11 = arith.constant -1.000000e+00 : f32
    %54 = vector.broadcast %cst_10 : f32 to vector<16x1xf32>
    %55 = vector.broadcast %cst_11 : f32 to vector<16x1xf32>
    %56 = arith.select %53, %54, %55 : vector<16x1xi1>, vector<16x1xf32>
    %c16_i32_12 = arith.constant 16 : i32
    %57 = vector.broadcast %c16_i32_12 : i32 to vector<16x1xi32>
    %58 = arith.cmpi slt, %47, %57 : vector<16x1xi32>
    %cst_13 = arith.constant 0.000000e+00 : f32
    %59 = vector.broadcast %cst_13 : f32 to vector<16x1xf32>
    %60 = arith.select %58, %56, %59 : vector<16x1xi1>, vector<16x1xf32>
    %c8_i32_14 = arith.constant 8 : i32
    %61 = vector.broadcast %c8_i32_14 : i32 to vector<1x16xi32>
    %62 = arith.cmpi slt, %51, %61 : vector<1x16xi32>
    %cst_15 = arith.constant 1.000000e+00 : f32
    %cst_16 = arith.constant -1.000000e+00 : f32
    %63 = vector.broadcast %cst_15 : f32 to vector<1x16xf32>
    %64 = vector.broadcast %cst_16 : f32 to vector<1x16xf32>
    %65 = arith.select %62, %63, %64 : vector<1x16xi1>, vector<1x16xf32>
    %c16_i32_17 = arith.constant 16 : i32
    %66 = vector.broadcast %c16_i32_17 : i32 to vector<1x16xi32>
    %67 = arith.cmpi slt, %51, %66 : vector<1x16xi32>
    %cst_18 = arith.constant 0.000000e+00 : f32
    %68 = vector.broadcast %cst_18 : f32 to vector<1x16xf32>
    %69 = arith.select %67, %65, %68 : vector<1x16xi1>, vector<1x16xf32>
    %70 = vector.broadcast %60 : vector<16x1xf32> to vector<16x16xf32>
    %71 = arith.mulf %43, %70 : vector<16x16xf32>
    %cst_19 = arith.constant dense<0.000000e+00> : vector<16xf32>
    %72 = vector.multi_reduction <add>, %71, %cst_19 [0] : vector<16x16xf32> to vector<16xf32>
    %73 = vector.shape_cast %72 : vector<16xf32> to vector<1x16xf32>
    %74 = arith.mulf %73, %69 : vector<1x16xf32>
    %c0_i32 = arith.constant 0 : i32
    %75 = arith.cmpi eq, %arg1, %c0_i32 : i32
    %76 = arith.extui %75 : i1 to i32
    %c0_i32_20 = arith.constant 0 : i32
    %77 = arith.cmpi ne, %76, %c0_i32_20 : i32
    scf.if %77 {
      %cst_27 = arith.constant 0.000000e+00 : f32
      %82 = vector.broadcast %cst_27 : f32 to vector<1x1x16xf32>
      %c0_28 = arith.constant 0 : index
      %c0_29 = arith.constant 0 : index
      %c0_30 = arith.constant 0 : index
      %83 = vector.load %arg5[%c0_28, %c0_29, %c0_30] : memref<1x1x16xf32, #tpu.memory_space<vmem>>, vector<1x1x16xf32>
      tpu.vector_store %arg5[%c0_28, %c0_29, %c0_30], %82 {strides = array<i32>} : memref<1x1x16xf32, #tpu.memory_space<vmem>>, vector<1x1x16xf32>,
    } else {
    }
    %c0_21 = arith.constant 0 : index
    %c0_22 = arith.constant 0 : index
    %c0_23 = arith.constant 0 : index
    %78 = vector.load %arg5[%c0_21, %c0_22, %c0_23] : memref<1x1x16xf32, #tpu.memory_space<vmem>>, vector<1x1x16xf32>
    %79 = vector.shape_cast %74 : vector<1x16xf32> to vector<1x1x16xf32>
    %80 = arith.addf %78, %79 : vector<1x1x16xf32>
    %c0_24 = arith.constant 0 : index
    %c0_25 = arith.constant 0 : index
    %c0_26 = arith.constant 0 : index
    %81 = vector.load %arg5[%c0_24, %c0_25, %c0_26] : memref<1x1x16xf32, #tpu.memory_space<vmem>>, vector<1x1x16xf32>
    tpu.vector_store %arg5[%c0_24, %c0_25, %c0_26], %80 {strides = array<i32>} : memref<1x1x16xf32, #tpu.memory_space<vmem>>, vector<1x1x16xf32>,
    return
  }
  func.func @transform_0(%arg0: i32, %arg1: i32, %arg2: memref<5xf32, #tpu.memory_space<smem>>) -> (i32, i32) {
    %c0_i32 = arith.constant 0 : i32
    %c0_i32_0 = arith.constant 0 : i32
    return %arg0, %c0_i32 : i32, i32
  }
  func.func @transform_1(%arg0: i32, %arg1: i32, %arg2: memref<5xf32, #tpu.memory_space<smem>>) -> (i32, i32) {
    %c0_i32 = arith.constant 0 : i32
    %c0_i32_0 = arith.constant 0 : i32
    return %arg1, %c0_i32 : i32, i32
  }
  func.func @transform_2(%arg0: i32, %arg1: i32, %arg2: memref<5xf32, #tpu.memory_space<smem>>) -> (i32, i32, i32) {
    %c0_i32 = arith.constant 0 : i32
    %c0_i32_0 = arith.constant 0 : i32
    %c0_i32_1 = arith.constant 0 : i32
    return %arg0, %c0_i32, %c0_i32_0 : i32, i32, i32
  }
}

</mosaic_0001>

<bundles_post_ra>
// kernel: mmd_loss.1
= control target key start
LH: loop header
LB: loop body
LE: loop exit
PB: predicated region body
PF: predicated region fallthrough
CT: control target
= control target key end

     0   :  { %s401_s0 = inlined_call_operand.vmem [shape: f32[5], index: 0, kind: input, shape index: {}]   ;;  %s402_s1 = inlined_call_operand.vmem [shape: f32[16,32], index: 1, kind: input, shape index: {}, may-alias: {1,2}]   ;;  %s403_s2 = inlined_call_operand.vmem [shape: f32[16,32], index: 2, kind: input, shape index: {}, may-alias: {1,2}]   ;;  %s404_s3 = inlined_call_operand.vmem [shape: f32[1,1,16], index: 3, kind: output, shape index: {}]  }
   0x1   :  { %s8_s14 = sshll.u32 %s401_s0, 4  ;;  %s9_s14 = int_to_ptr.vmem [resolvable:$true] %s8_s14 }
   0x2   :  { %s319_s15 = scalar_lea.vmem %s9_s14, 16  ;;  %p324_p1 = scmp.lt.s32.totalorder %s9_s14, %s9_s14 }
   0x3   :  { %p320_p0 = scmp.ne.s32.totalorder %s9_s14, %s319_s15  ;;  %p325_p2 = scmp.lt.s32.totalorder %s319_s15, %s319_s15 }
   0x5   :  { %p326_p3 = por %p325_p2, %p324_p1 }
   0x7   :  { %p327_p4 = pnand %p326_p3, %p320_p0 }
   0x9   :  { %330 = shalt.err (!%p327_p4)  }
   0xa   :  { %s333_s16 = smov [#allocation3]  }
   0xb   :  { %11 = dma.vmem_to_smem %s9_s14, 16, %s333_s16, [#allocation2] }
   0xc   :  { %331 = dma.done.wait [#allocation2], 16 }
   0xd   :  { %332 = vsyncadd [#allocation2], 4294967280 }
   0xe   :  { %13 = sfence }
   0xf   :  { %v20_v0 = vld [vmem:[%s403_s2] sm:$0xff]  ;;  %vm24_vm0 = vcmask 261120   ;;  %v21_v1 = vld [vmem:[%s403_s2 + $0x8] sm:$0xff]  ;;  %vm261_vm2 = vcmask 122880   ;;  %v334_v15 = vmov 0.0   ;;  %v158_v18 = vlaneseq  ;;  %s170_s24 = sld [smem:[#allocation3]] }
  0x10   :  { %v18_v2 = vld [vmem:[%s402_s1] sm:$0xff]  ;;  %v31_v3 = vmul.f32 %v20_v0, %v20_v0  ;;  %v32_v4 = vmul.f32 %v21_v1, %v21_v1  ;;  %v290_v5 = vpack.c.bf16 %v21_v1, %v20_v0  ;;  %vm291_vm1 = vmpackc.low %vm24_vm0, %vm24_vm0  ;;  %v19_v6 = vld [vmem:[%s402_s1 + $0x8] sm:$0xff]  ;;  %262 = vst.msk [vmem:[%s404_s3] sm:$0x1] %vm261_vm2, %v334_v15  ;;  %s275_s25 = sld [smem:[#allocation3 + $0x1]]  ;;  %s384_s26 = sld [smem:[#allocation3 + $0x2]] }
  0x11   :  { %287 = vmatprep.mubr.msk.f32.mxu0 %vm24_vm0, %v18_v2  ;;  %v22_v7 = vmul.f32 %v18_v2, %v18_v2  ;;  %v23_v8 = vmul.f32 %v19_v6, %v19_v6  ;;  %v159_v19 = vshrl.u32 %v158_v18, 7  ;;  %s386_s27 = sld [smem:[#allocation3 + $0x3]]  ;;  %s388_s28 = sld [smem:[#allocation3 + $0x4]]  ;;  %vm246_vm3 = vcmask 130048  }
  0x12   :  { %v33_v9 = vsel %vm24_vm0, %v31_v3, 0.0  ;;  %292 = vmatprep.subr.msk.bf16.mxu0 %vm291_vm1, %v290_v5  ;;  %v36_v11 = vsel %vm24_vm0, %v32_v4, 0.0 }
  0x13   :  { %34 = vadd.xlane.f32.xlu0 %v33_v9  ;;  %295 = vmatpush3.bf16.xpose.msk.msra.mxu0 %vm291_vm1, %v290_v5  ;;  %v28_v10 = vsel %vm24_vm0, %v23_v8, 0.0  ;;  %v25_v12 = vsel %vm24_vm0, %v22_v7, 0.0  ;;  %v160_v21 = vsub.s32 0, %v159_v19 }
  0x14   :  { %29 = vadd.xlane.f32.xlu1 %v28_v10 }
  0x15   :  { %v171_v31 = vstv %s170_s24 }
  0x16   :  { %v181_v32 = vstv %s275_s25  ;;  %v191_v33 = vstv %s384_s26 }
  0x17   :  { %37 = vadd.xlane.f32.xlu0 %v36_v11  ;;  %v201_v34 = vstv %s386_s27  ;;  %v211_v37 = vstv %s388_s28 }
  0x18   :  { %26 = vadd.xlane.f32.xlu1 %v25_v12 }
  0x1a   :  { %288 = vmatmul.mubr.msk.f32.vlgmr.msra.gmra.mrb[0].mxu0 %vm24_vm0, %v19_v6 }
  0xa0   :  { %v35_v13 = vpop.xlane.xlu0 %34 }
  0xa1   :  { %126 = vxpose.xlu0.b32.start [1/2] (short) (narrow) %v35_v13, 8  ;;  %v30_v20 = vpop.xlane.xlu1 %29 }
  0xa4   :  { %v38_v14 = vpop.xlane.xlu0 %37 }
  0xa5   :  { %127 = vxpose.xlu0.b32.end [2/2] (short) (narrow) %v38_v14, 8  ;;  %v27_v23 = vpop.xlane.xlu1 %26 }
  0xed   :  { %v289_v16 = vpop.f32.mrb[0].mxu0 }
  0xee   :  { %v117_v17 = vpop.f32.mrb[1].mxu0  ;;  %v165_v25 = vmul.f32 2.0, %v289_v16  ;;  %v229_v16 = vand.u32 127, %v158_v18 }
  0xef   :  { %v164_v26 = vmul.f32 2.0, %v117_v17 }
  0xf0   :  { %vm240_vm4 = vcmp.lt.s32.totalorder %v229_v16, 8  ;;  %vm242_vm5 = vcmp.lt.s32.totalorder %v229_v16, 16 }
 0x121   :  { %v142_v22 = vpop.trf.xlu0 }
 0x122   :  { %v161_v24 = vrot.slane %v142_v22, %v160_v21  ;;  %v335_v21 = vmov -1.0  }
 0x123   :  { %v241_v22 = vsel %vm240_vm4, 1.0, %v335_v21 }
 0x124   :  { %v163_v27 = vadd.f32 %v161_v24, %v30_v20  ;;  %v162_v28 = vadd.f32 %v161_v24, %v27_v23 }
 0x126   :  { %v167_v29 = vsub.f32 %v163_v27, %v165_v25  ;;  %v166_v30 = vsub.f32 %v162_v28, %v164_v26  ;;  %v243_v25 = vsel %vm242_vm5, %v241_v22, 0.0  ;;  %v263_v27 = vld [vmem:[%s404_s3] sm:$0x1] }
 0x128   :  { %v169_v35 = vmax.f32 %v167_v29, 0.0  ;;  %v168_v36 = vmax.f32 %v166_v30, 0.0 }
 0x12a   :  { %v173_v38 = vmul.f32 %v171_v31, %v169_v35  ;;  %v183_v39 = vmul.f32 %v181_v32, %v169_v35  ;;  %v193_v40 = vmul.f32 %v191_v33, %v169_v35  ;;  %v203_v41 = vmul.f32 %v201_v34, %v169_v35 }
 0x12b   :  { %v172_v42 = vmul.f32 %v171_v31, %v168_v36  ;;  %v182_v45 = vmul.f32 %v181_v32, %v168_v36  ;;  %v213_v47 = vmul.f32 %v211_v37, %v169_v35  ;;  %v192_v49 = vmul.f32 %v191_v33, %v168_v36 }
 0x12c   :  { %v176_v43 = vmul.f32 1.442695, %v173_v38  ;;  %v186_v44 = vmul.f32 1.442695, %v183_v39  ;;  %v196_v46 = vmul.f32 1.442695, %v193_v40  ;;  %v202_v52 = vmul.f32 %v201_v34, %v168_v36 }
 0x12d   :  { %v206_v48 = vmul.f32 1.442695, %v203_v41  ;;  %v174_v50 = vmul.f32 1.442695, %v172_v42  ;;  %v184_v51 = vmul.f32 1.442695, %v182_v45  ;;  %v212_v55 = vmul.f32 %v211_v37, %v168_v36 }
 0x12e   :  { %299 = vpow2.f32 %v176_v43  ;;  %v216_v53 = vmul.f32 1.442695, %v213_v47  ;;  %v194_v54 = vmul.f32 1.442695, %v192_v49  ;;  %v204_v56 = vmul.f32 1.442695, %v202_v52 }
 0x12f   :  { %301 = vpow2.f32 %v186_v44  ;;  %v214_v57 = vmul.f32 1.442695, %v212_v55 }
 0x130   :  { %303 = vpow2.f32 %v196_v46 }
 0x131   :  { %305 = vpow2.f32 %v206_v48 }
 0x132   :  { %307 = vpow2.f32 %v174_v50 }
 0x133   :  { %309 = vpow2.f32 %v184_v51 }
 0x134   :  { %311 = vpow2.f32 %v216_v53 }
 0x135   :  { %313 = vpow2.f32 %v194_v54 }
 0x136   :  { %315 = vpow2.f32 %v204_v56 }
 0x137   :  { %317 = vpow2.f32 %v214_v57 }
 0x138   :  { %v300_v58 = vpop.eup %299 }
 0x139   :  { %v302_v59 = vpop.eup %301 }
 0x13a   :  { %v189_v60 = vadd.f32 %v302_v59, %v300_v58  ;;  %v304_v61 = vpop.eup %303 }
 0x13b   :  { %v306_v62 = vpop.eup %305 }
 0x13c   :  { %v199_v63 = vadd.f32 %v304_v61, %v189_v60  ;;  %v308_v0 = vpop.eup %307 }
 0x13d   :  { %v310_v1 = vpop.eup %309 }
 0x13e   :  { %v209_v2 = vadd.f32 %v306_v62, %v199_v63  ;;  %v312_v3 = vpop.eup %311  ;;  %v188_v4 = vadd.f32 %v310_v1, %v308_v0 }
 0x13f   :  { %v314_v5 = vpop.eup %313 }
 0x140   :  { %v219_v6 = vadd.f32 %v312_v3, %v209_v2  ;;  %v198_v7 = vadd.f32 %v314_v5, %v188_v4  ;;  %v316_v8 = vpop.eup %315 }
 0x141   :  { %v318_v11 = vpop.eup %317 }
 0x142   :  { %v245_v9 = vmul.f32 -1.0, %v219_v6  ;;  %v208_v10 = vadd.f32 %v316_v8, %v198_v7 }
 0x144   :  { %v248_v12 = vsel %vm246_vm3, %v245_v9, 0.0  ;;  %v218_v13 = vadd.f32 %v318_v11, %v208_v10 }
 0x146   :  { %v247_v14 = vsel %vm246_vm3, %v218_v13, 0.0 }
 0x147   :  { %v249_v15 = vadd.f32 %v248_v12, %v247_v14 }
 0x149   :  { %v250_v17 = vrot.slane %v249_v15, 4 }
 0x14b   :  { %v251_v19 = vadd.f32 %v250_v17, %v249_v15 }
 0x14d   :  { %v252_v20 = vrot.slane %v251_v19, 2 }
 0x14f   :  { %v253_v23 = vadd.f32 %v252_v20, %v251_v19 }
 0x151   :  { %v254_v24 = vrot.slane %v253_v23, 1 }
 0x153   :  { %v255_v26 = vadd.f32 %v254_v24, %v253_v23 }
 0x155   :  { %v256_v28 = vmul.f32 %v255_v26, %v243_v25 }
 0x157   :  { %v264_v29 = vadd.f32 %v263_v27, %v256_v28 }
 0x159   :  { %266 = vst.msk [vmem:[%s404_s3] sm:$0x1] %vm261_vm2, %v264_v29 }

</bundles_post_ra>
